<compile_context>
chip_gen: v6e
topology: v6e:2x2x1
jax: 0.10.0
libtpu: 0.0.40
codegen_flags: <defaults>
</compile_context>

<pallas_src>
import functools

import jax
import jax.numpy as jnp
from jax.experimental import pallas as pl
from jax.experimental.pallas import tpu as pltpu


def _contrastive_loss_kernel(sim_ref, lab_col_ref, lab_row_ref, out_ref, *,
                             margin, batch_size, tile_rows, compute_dtype):
    # (TR, B) tile of the similarity matrix, in the chosen compute dtype.
    sim = sim_ref[...]
    if sim.dtype != compute_dtype:
        sim = sim.astype(compute_dtype)

    # pos_mask via pure VPU broadcast compare: (TR, 1) == (1, B) -> (TR, B).
    pos_mask = lab_col_ref[...] == lab_row_ref[...]

    # Fused masked hinge: positive pairs contribute sim, negative pairs
    # contribute relu(margin - sim); single select, f32 accumulation.
    hinge = jnp.maximum(jnp.asarray(margin, dtype=compute_dtype) - sim,
                        jnp.zeros((), dtype=compute_dtype))
    vals = jnp.where(pos_mask, sim, hinge).astype(jnp.float32)

    num_tiles = -(-batch_size // tile_rows)
    rem = batch_size % tile_rows

    def _write(v):
        out_ref[...] = jnp.full(out_ref.shape, jnp.sum(v), dtype=jnp.float32)

    if rem == 0:
        # No remainder tile -> no masking emitted anywhere.
        _write(vals)
    else:
        # Hot path: full tiles take the unmasked sum.
        @pl.when(pl.program_id(0) != num_tiles - 1)
        def _():
            _write(vals)

        # Cold path: only the last (partial) tile masks its padded rows.
        @pl.when(pl.program_id(0) == num_tiles - 1)
        def _():
            row_idx = jax.lax.broadcasted_iota(jnp.int32, vals.shape, 0)
            _write(jnp.where(row_idx < rem, vals, 0.0))


def _vmem_capacity_bytes() -> int:
    try:
        return int(pltpu.get_tpu_info().vmem_capacity_bytes)
    except Exception:
        return 64 * 1024 * 1024  # conservative fallback: v7x per-TC VMEM


def _is_v5e() -> bool:
    try:
        kind = jax.devices()[0].device_kind.lower()
    except Exception:
        return False
    return ("v5 lite" in kind) or ("v5e" in kind) or ("v5lite" in kind)


def contrastive_loss(similarity_matrix: jax.Array, labels: jax.Array,
                     margin: float, *, tile_rows: int | None = None) -> jax.Array:
    """Matches ContrastiveLoss.forward: returns the scalar total_loss."""
    b = similarity_matrix.shape[0]
    in_dtype = similarity_matrix.dtype
    labels = labels.astype(jnp.int32)
    labels_col = labels.reshape(b, 1)
    labels_row = labels.reshape(1, b)

    # bf16 compute where the VALU natively supports it (v6e/v7x); f32 else.
    if in_dtype == jnp.bfloat16 and not _is_v5e():
        compute_dtype = jnp.bfloat16
    else:
        compute_dtype = jnp.float32

    # Generation-dependent VMEM budget.
    vmem_cap = _vmem_capacity_bytes()
    if vmem_cap <= 64 * 1024 * 1024:       # v7x-class: 64 MiB per TensorCore
        vmem_limit = 40 * 1024 * 1024
    else:                                  # v5e / v6e: 128 MiB
        vmem_limit = 96 * 1024 * 1024
    # Honest per-step working set: 2x double-buffered input tile plus
    # ~3-4x f32-equivalent block-sized intermediates -> raw tile cap = /6.
    raw_tile_cap = vmem_limit // 6

    # Sublane packing multiple for the input dtype.
    sub = {4: 8, 2: 16, 1: 32}.get(in_dtype.itemsize, 8)

    if tile_rows is None:
        bytes_per_row = b * in_dtype.itemsize
        max_rows = max(sub,
                       ((raw_tile_cap // max(bytes_per_row, 1)) // sub) * sub)
        # Prefer >=2 grid tiles so both v7x TensorCores get work.
        half_rows = ((-(-b // 2) + sub - 1) // sub) * sub
        target = min(max_rows, half_rows)
        tile_rows = b if target >= b else target
    num_tiles = -(-b // tile_rows)

    kernel = functools.partial(
        _contrastive_loss_kernel,
        margin=float(margin),
        batch_size=b,
        tile_rows=tile_rows,
        compute_dtype=compute_dtype,
    )

    in_bytes = (similarity_matrix.size * in_dtype.itemsize + 2 * b * 4)
    out_bytes = num_tiles * 128 * 4
    cost = pl.CostEstimate(flops=3 * b * b, transcendentals=0,
                           bytes_accessed=in_bytes + out_bytes)

    partials = pl.pallas_call(
        kernel,
        out_shape=jax.ShapeDtypeStruct((num_tiles, 1, 128), jnp.float32),
        grid=(num_tiles,),
        in_specs=[
            pl.BlockSpec((tile_rows, b), lambda i: (i, 0)),   # sim row tile
            pl.BlockSpec((tile_rows, 1), lambda i: (i, 0)),   # labels (col)
            pl.BlockSpec((1, b), lambda i: (0, 0)),           # labels (row), resident
        ],
        out_specs=pl.BlockSpec((1, 1, 128), lambda i: (i, 0, 0)),
        compiler_params=pltpu.CompilerParams(
            dimension_semantics=("parallel",),
            vmem_limit_bytes=vmem_limit,
        ),
        cost_estimate=cost,
    )(similarity_matrix, labels_col, labels_row)

    # Tiny final reduction + normalization in plain JAX.
    return jnp.sum(partials[:, 0, 0]) / jnp.float32(b)


def _reference(similarity_matrix, labels, margin):
    b = similarity_matrix.shape[0]
    pos_mask = labels[:, None] == labels[None, :]
    pos_loss = jnp.sum(jnp.where(pos_mask, similarity_matrix, 0.0))
    neg_loss = jnp.sum(
        jnp.where(pos_mask, 0.0, jax.nn.relu(margin - similarity_matrix))
    )
    return (pos_loss + neg_loss) / b


if __name__ == "__main__":
    key = jax.random.PRNGKey(0)
    k1, k2, k3, k4, k5, k6 = jax.random.split(key, 6)
    margin = 0.5

    # Case 1: B = 8 (aligned, single tile).
    B = 8
    sim = jax.random.uniform(k1, (B, B), jnp.float32, -1.0, 1.0)
    lab = jax.random.randint(k2, (B,), 0, 3, dtype=jnp.int32)
    loss = jax.block_until_ready(contrastive_loss(sim, lab, margin))
    ref = _reference(sim, lab, margin)
    assert jnp.allclose(loss, ref, rtol=1e-5, atol=1e-5), (loss, ref)

    # Case 2: B = 20 with forced 8-row tiles -> exercises the multi-tile
    # grid and the pl.when remainder-masking path.
    B = 20
    sim = jax.random.uniform(k3, (B, B), jnp.float32, -1.0, 1.0)
    lab = jax.random.randint(k4, (B,), 0, 4, dtype=jnp.int32)
    loss = jax.block_until_ready(contrastive_loss(sim, lab, margin, tile_rows=8))
    ref = _reference(sim, lab, margin)
    assert jnp.allclose(loss, ref, rtol=1e-5, atol=1e-5), (loss, ref)

    # Case 3: B = 5 (not a multiple of 8/128) -> exercises logical-shape
    # masking of the vreg padding in the reduction.
    B = 5
    sim = jax.random.uniform(k5, (B, B), jnp.float32, -1.0, 1.0)
    lab = jax.random.randint(k6, (B,), 0, 2, dtype=jnp.int32)
    loss = jax.block_until_ready(contrastive_loss(sim, lab, margin))
    ref = _reference(sim, lab, margin)
    assert jnp.allclose(loss, ref, rtol=1e-5, atol=1e-5), (loss, ref)

    print("KERNEL_OK")
</pallas_src>

<mosaic_0001>
module attributes {stable_mosaic.version = 11 : i64} {
  func.func @_contrastive_loss_kernel(%arg0: i32, %arg1: memref<8x8xf32, #tpu.memory_space<vmem>>, %arg2: memref<8x1xi32, #tpu.memory_space<vmem>>, %arg3: memref<1x8xi32, #tpu.memory_space<vmem>>, %arg4: memref<1x1x128xf32, #tpu.memory_space<vmem>>) attributes {dimension_semantics = [#tpu.dimension_semantics<parallel>], iteration_bounds = array<i64: 1>, scalar_prefetch = 0 : i64, scratch_operands = 0 : i64, tpu.core_type = #tpu.core_type<tc>, window_params = [{transform_indices = @transform_0, window_bounds = array<i64: 8, 8>}, {transform_indices = @transform_1, window_bounds = array<i64: 8, 1>}, {pipeline_mode = #tpu.pipeline_mode<synchronous>, transform_indices = @transform_2, window_bounds = array<i64: 1, 8>}, {transform_indices = @transform_3, window_bounds = array<i64: 1, 1, 128>}]} {
    %c0 = arith.constant 0 : index
    %c0_0 = arith.constant 0 : index
    %0 = vector.load %arg1[%c0, %c0_0] : memref<8x8xf32, #tpu.memory_space<vmem>>, vector<8x8xf32>
    %c0_1 = arith.constant 0 : index
    %c0_2 = arith.constant 0 : index
    %1 = vector.load %arg2[%c0_1, %c0_2] : memref<8x1xi32, #tpu.memory_space<vmem>>, vector<8x1xi32>
    %c0_3 = arith.constant 0 : index
    %c0_4 = arith.constant 0 : index
    %2 = vector.load %arg3[%c0_3, %c0_4] : memref<1x8xi32, #tpu.memory_space<vmem>>, vector<1x8xi32>
    %3 = vector.broadcast %1 : vector<8x1xi32> to vector<8x8xi32>
    %4 = vector.broadcast %2 : vector<1x8xi32> to vector<8x8xi32>
    %5 = arith.cmpi eq, %3, %4 : vector<8x8xi32>
    %cst = arith.constant 5.000000e-01 : f32
    %6 = vector.broadcast %cst : f32 to vector<8x8xf32>
    %7 = arith.subf %6, %0 : vector<8x8xf32>
    %cst_5 = arith.constant 0.000000e+00 : f32
    %8 = vector.broadcast %cst_5 : f32 to vector<8x8xf32>
    %9 = arith.maximumf %7, %8 : vector<8x8xf32>
    %10 = arith.select %5, %0, %9 : vector<8x8xi1>, vector<8x8xf32>
    %11 = vector.shape_cast %10 : vector<8x8xf32> to vector<1x8x8xf32>
    %cst_6 = arith.constant dense<0.000000e+00> : vector<1xf32>
    %12 = vector.multi_reduction <add>, %11, %cst_6 [1, 2] : vector<1x8x8xf32> to vector<1xf32>
    %13 = vector.shape_cast %12 : vector<1xf32> to vector<1x1x1xf32>
    %14 = vector.extract %13[0, 0, 0] : f32 from vector<1x1x1xf32>
    %15 = vector.broadcast %14 : f32 to vector<1x1x128xf32>
    %c0_7 = arith.constant 0 : index
    %c0_8 = arith.constant 0 : index
    %c0_9 = arith.constant 0 : index
    %16 = vector.load %arg4[%c0_7, %c0_8, %c0_9] : memref<1x1x128xf32, #tpu.memory_space<vmem>>, vector<1x1x128xf32>
    tpu.vector_store %arg4[%c0_7, %c0_8, %c0_9], %15 {strides = array<i32>} : memref<1x1x128xf32, #tpu.memory_space<vmem>>, vector<1x1x128xf32>,
    return
  }
  func.func @transform_0(%arg0: i32) -> (i32, i32) {
    %c0_i32 = arith.constant 0 : i32
    %c0_i32_0 = arith.constant 0 : i32
    return %arg0, %c0_i32 : i32, i32
  }
  func.func @transform_1(%arg0: i32) -> (i32, i32) {
    %c0_i32 = arith.constant 0 : i32
    %c0_i32_0 = arith.constant 0 : i32
    return %arg0, %c0_i32 : i32, i32
  }
  func.func @transform_2(%arg0: i32) -> (i32, i32) {
    %c0_i32 = arith.constant 0 : i32
    %c0_i32_0 = arith.constant 0 : i32
    %c0_i32_1 = arith.constant 0 : i32
    return %c0_i32, %c0_i32_0 : i32, i32
  }
  func.func @transform_3(%arg0: i32) -> (i32, i32, i32) {
    %c0_i32 = arith.constant 0 : i32
    %c0_i32_0 = arith.constant 0 : i32
    %c0_i32_1 = arith.constant 0 : i32
    return %arg0, %c0_i32, %c0_i32_0 : i32, i32, i32
  }
}

</mosaic_0001>

<bundles_post_ra>
// kernel: tpu_custom_call.1
= control target key start
LH: loop header
LB: loop body
LE: loop exit
PB: predicated region body
PF: predicated region fallthrough
CT: control target
= control target key end

     0   :  { %v84_v1 = vmov 0   ;;  %s118_s0 = inlined_call_operand.vmem [shape: f32[8,8], index: 0, kind: input, shape index: {}]   ;;  %s119_s1 = inlined_call_operand.vmem [shape: s32[8,1], index: 1, kind: input, shape index: {}]   ;;  %s120_s2 = inlined_call_operand.vmem [shape: s32[1,8], index: 2, kind: input, shape index: {}]   ;;  %s121_s3 = inlined_call_operand.hbm [shape: f32[1,1,128], index: 3, kind: output, shape index: {}]  }
   0x1   :  { %v16_v0 = vld [vmem:[%s119_s1] sm:$0xff]  ;;  %61 = vset.pattern.permute.xlu0 %v84_v1 }
   0x2   :  { %8 = vsyncpa [#allocation3], 0  ;;  %19 = vperm.xlu0 %61, %v16_v0   ;;  %v15_v2 = vld [vmem:[%s118_s0] sm:$0xff]  ;;  %vm29_vm0 = vcmask 64512   ;;  %s85_s0 = smov [#allocation2]  }
   0x3   :  { %v26_v3 = vsub.f32 0.5, %v15_v2  ;;  %v56_v4 = vld [vmem:[%s120_s2] ss:$0 sm:$0xff]  ;;  %s48_s1 = sshll.u32 %s85_s0, 4  ;;  %s49_s1 = int_to_ptr.vmem [resolvable:$true] %s48_s1 }
   0x4   :  { %s62_s2 = scalar_lea.vmem %s49_s1, 16  ;;  %s66_s19 = scalar_lea.vmem %s49_s1, 32 }
   0x5   :  { %v27_v5 = vmax.f32 %v26_v3, 0.0  ;;  %p63_p0 = scmp.ne.s32.totalorder %s49_s1, %s62_s2  ;;  %p67_p1 = scmp.lt.s32.totalorder %s49_s1, %s49_s1 }
   0x6   :  { %p68_p2 = scmp.lt.s32.totalorder %s66_s19, %s62_s2 }
   0x8   :  { %p69_p3 = por %p68_p2, %p67_p1 }
   0xa   :  { %p70_p4 = pnand %p69_p3, %p63_p0 }
  0x7d   :  { %v20_v6 = vpop.permute.xlu0 %19 }
  0x7e   :  { %vm25_vm1 = vcmp.eq.s32.totalorder %v20_v6, %v56_v4 }
  0x7f   :  { %v28_v7 = vsel %vm25_vm1, %v15_v2, %v27_v5 }
  0x80   :  { %v30_v8 = vsel %vm29_vm0, %v28_v7, 0.0 }
  0x81   :  { %31 = vadd.xlane.f32.xlu0 %v30_v8 }
 0x10a   :  { %v32_v9 = vpop.xlane.xlu0 %31 }
 0x10b   :  { %v33_v10 = vrot.slane %v32_v9, 4 }
 0x10d   :  { %v34_v11 = vadd.f32 %v33_v10, %v32_v9 }
 0x10f   :  { %v35_v12 = vrot.slane %v34_v11, 2 }
 0x111   :  { %v36_v13 = vadd.f32 %v35_v12, %v34_v11 }
 0x113   :  { %v37_v14 = vrot.slane %v36_v13, 1 }
 0x115   :  { %v38_v15 = vadd.f32 %v37_v14, %v36_v13 }
 0x117   :  { %57 = vpush %v38_v15 }
 0x148   :  { %s58_s18 = spop %57 }
 0x149   :  { %v40_v16 = vstv %s58_s18 }
 0x14a   :  { %41 = vst [vmem:[#allocation2] sm:$0x1] %v40_v16 }
 0x14b   :  { %73 = shalt.err (!%p70_p4)
}
 0x14c   :  { %51 = dma.vmem_to_hbm [thread:$0]  %s49_s1, 16, %s121_s3, [#allocation3]  }
 0x14d   :  { %82 = dma.done.wait [#allocation3], 16  }
 0x14e   :  { %83 = vsyncadd [#allocation3], 4294967280 }
 0x14f   :  { %55 = vsyncpa [#allocation3], 1 }

</bundles_post_ra>
